<compile_context>
chip_gen: v7x
topology: tpu7x:2x2x1
jax: 0.10.0
libtpu: 0.0.40
codegen_flags: <defaults>
</compile_context>

<pallas_src>
import functools

import jax
import jax.numpy as jnp
from jax.experimental import pallas as pl
from jax.experimental.pallas import tpu as pltpu

_LANE = 128


# --------------------------------------------------------------------------- #
# Kernel body
# --------------------------------------------------------------------------- #
def _head_kernel(x_ref, wt_ref, b_ref, o_ref):
    # x_ref:  (tile_n, D) native dtype  -- token tile, cast to bf16 in-VMEM
    # wt_ref: (C, D)      bf16          -- PyTorch Linear weight layout (out, in)
    # b_ref:  (C, 1)      f32           -- bias
    # o_ref:  (C, tile_n)               -- token dim on lanes (lane-dense vst)
    xt = x_ref[...].astype(jnp.bfloat16)          # in-kernel cast: saves an HBM pass
    acc = jax.lax.dot_general(
        wt_ref[...], xt,
        dimension_numbers=(((1,), (1,)), ((), ())),   # (C,D) . (tile_n,D)^T
        preferred_element_type=jnp.float32,
    )
    o_ref[...] = (acc + b_ref[...]).astype(o_ref.dtype)


# --------------------------------------------------------------------------- #
# Generation-aware configuration
# --------------------------------------------------------------------------- #
def _tpu_config():
    """Pick VMEM limit / tile budget / TC count per chip generation."""
    kind = ""
    try:
        kind = jax.devices()[0].device_kind.lower()
    except Exception:
        pass
    phys_vmem = None
    try:
        phys_vmem = pltpu.get_tpu_info().vmem_capacity_bytes
    except Exception:
        pass

    if "v7" in kind or (phys_vmem is not None and phys_vmem <= (80 << 20)):
        # v7x: 64 MiB physical VMEM per TC, 2 TensorCores, ~3.2 TB/s HBM.
        return {"vmem_limit": 48 << 20, "budget": 40 << 20,
                "tile_cap": 8192, "num_tc": 2}
    if "v6" in kind:
        # v6e: 128 MiB physical VMEM, single TC.
        return {"vmem_limit": 64 << 20, "budget": 56 << 20,
                "tile_cap": 8192, "num_tc": 1}
    # v5e and unknown chips: 128 MiB physical VMEM, single TC; 32 MiB is ample.
    return {"vmem_limit": 32 << 20, "budget": 24 << 20,
            "tile_cap": 8192, "num_tc": 1}


def _choose_tile_n(N, B, per_tok_bytes, fixed_bytes, budget, tile_cap, num_tc):
    """Largest token tile under the VMEM budget that divides N exactly
    (so the pad/slice fallback never fires in practice)."""
    cap = min(tile_cap,
              max(_LANE, (budget - fixed_bytes) // max(per_tok_bytes, 1)))

    if N <= cap:
        # Only on a 2-TC chip with too few batch steps: split the row into two
        # equal lane-aligned halves so both TensorCores get work.  Single-TC
        # chips keep the whole row (the grid is a serial loop there).
        if num_tc >= 2 and B < num_tc and N % (2 * _LANE) == 0:
            return N // 2
        return N                                   # full dim: always a legal block

    # Largest 128-aligned exact divisor of N under the cap -> zero padding.
    t = (cap // _LANE) * _LANE
    while t >= _LANE:
        if N % t == 0:
            return t
        t -= _LANE

    # Fallback (rare: N not a multiple of 128 and larger than the cap):
    # 128-aligned tile + pad/slice round trip in the wrapper.
    return (cap // _LANE) * _LANE


# --------------------------------------------------------------------------- #
# Wrapper
# --------------------------------------------------------------------------- #
def linear_head_nchw_pallas(x, weight, bias, *, out_dtype=None):
    """x: (B, N, D), weight: (C, D) [nn.Linear layout], bias: (C,) -> (B, C, N)."""
    B, N, D = x.shape
    C = weight.shape[0]
    out_dtype = x.dtype if out_dtype is None else out_dtype
    cfg = _tpu_config()

    # Only the tiny weight/bias are converted in the wrapper; x stays in its
    # native dtype and is cast inside the kernel (halves x HBM traffic vs an
    # XLA convert pass when x arrives as f32).
    wt = weight.astype(jnp.bfloat16)
    b2 = bias.reshape(C, 1).astype(jnp.float32)

    x_bytes = jnp.dtype(x.dtype).itemsize
    out_bytes = jnp.dtype(out_dtype).itemsize
    fixed = 2 * (C * D * 2 + C * 4)                       # resident weight + bias
    per_tok = 2 * D * x_bytes + 2 * C * out_bytes         # double-buffered x row + out col

    tile_n = _choose_tile_n(N, B, per_tok, fixed,
                            cfg["budget"], cfg["tile_cap"], cfg["num_tc"])
    num_tiles = -(-N // tile_n)                           # cdiv
    n_pad = num_tiles * tile_n
    if n_pad != N:
        # Fallback only; the chooser prefers exact divisors of N so this extra
        # HBM round trip should not fire for normal patch grids.
        x = jnp.pad(x, ((0, 0), (0, n_pad - N), (0, 0)))

    cost = pl.CostEstimate(
        flops=2 * B * n_pad * D * C,
        transcendentals=0,
        bytes_accessed=(B * n_pad * D * x_bytes
                        + C * D * 2
                        + B * n_pad * C * out_bytes),
    )

    out = pl.pallas_call(
        _head_kernel,
        out_shape=jax.ShapeDtypeStruct((B, C, n_pad), out_dtype),
        grid_spec=pltpu.PrefetchScalarGridSpec(
            num_scalar_prefetch=0,
            grid=(B, num_tiles),
            in_specs=[
                pl.BlockSpec((None, tile_n, D), lambda b, j: (b, j, 0)),  # x tokens
                pl.BlockSpec((C, D), lambda b, j: (0, 0)),                # weight (resident)
                pl.BlockSpec((C, 1), lambda b, j: (0, 0)),                # bias   (resident)
            ],
            out_specs=pl.BlockSpec((None, C, tile_n), lambda b, j: (b, 0, j)),
        ),
        compiler_params=pltpu.CompilerParams(
            dimension_semantics=("parallel", "parallel"),
            vmem_limit_bytes=cfg["vmem_limit"],
        ),
        cost_estimate=cost,
    )(x, wt, b2)

    if n_pad != N:
        out = out[:, :, :N]
    return out


def decoder_linear_forward(x, im_size, params, patch_size):
    """x: (B, N, d_encoder) -> (B, n_cls, H//patch_size, W//patch_size)."""
    H, W = im_size
    GS = H // patch_size
    B, N, _ = x.shape
    y = linear_head_nchw_pallas(x, params["weight"], params["bias"])  # (B, C, N)
    ws = N // GS
    # rearrange 'b (h w) c -> b c h w' is already fused into the kernel's
    # (B, C, N) layout; this reshape is free (no data movement).
    return y.reshape(B, y.shape[1], GS, ws)


def init_params(key, d_encoder, n_cls):
    # nn.Linear(d_encoder, n_cls): weight (n_cls, d_encoder), bias (n_cls,)
    kw, _ = jax.random.split(key)
    weight = jax.random.normal(kw, (n_cls, d_encoder), dtype=jnp.float32) * 0.02
    bias = jnp.zeros((n_cls,), dtype=jnp.float32)
    return {"weight": weight, "bias": bias}


if __name__ == "__main__":
    # Small shapes consistent with the module: patch_size=16, image 128x128 -> GS=8, N=64.
    B = 2
    d_encoder = 32
    n_cls = 8
    patch_size = 16
    H = W = 128
    GS = H // patch_size
    N = GS * (W // patch_size)   # 64 tokens

    key = jax.random.PRNGKey(0)
    kx, kp = jax.random.split(key)
    x = jax.random.normal(kx, (B, N, d_encoder), dtype=jnp.float32)
    params = init_params(kp, d_encoder, n_cls)

    fwd = jax.jit(functools.partial(decoder_linear_forward,
                                    im_size=(H, W),
                                    params=params,
                                    patch_size=patch_size))
    out = jax.block_until_ready(fwd(x))

    # f32 reference (kernel uses bf16 matmul inputs + f32 accumulation).
    ref = (x @ params["weight"].T + params["bias"]).reshape(B, GS, N // GS, n_cls)
    ref = jnp.transpose(ref, (0, 3, 1, 2))
    assert out.shape == (B, n_cls, GS, W // patch_size), out.shape
    assert jnp.allclose(out, ref, atol=2e-2, rtol=2e-2), \
        float(jnp.max(jnp.abs(out - ref)))

    print("KERNEL_OK")
</pallas_src>

<mosaic_0001>
module attributes {stable_mosaic.version = 11 : i64} {
  func.func @_head_kernel(%arg0: i32, %arg1: i32, %arg2: memref<1x64x32xf32, #tpu.memory_space<vmem>>, %arg3: memref<8x32xbf16, #tpu.memory_space<vmem>>, %arg4: memref<8x1xf32, #tpu.memory_space<vmem>>, %arg5: memref<1x8x64xf32, #tpu.memory_space<vmem>>) attributes {dimension_semantics = [#tpu.dimension_semantics<parallel>, #tpu.dimension_semantics<parallel>], iteration_bounds = array<i64: 2, 1>, scalar_prefetch = 0 : i64, scratch_operands = 0 : i64, tpu.core_type = #tpu.core_type<tc>, window_params = [{transform_indices = @transform_0, window_bounds = array<i64: 1, 64, 32>}, {pipeline_mode = #tpu.pipeline_mode<synchronous>, transform_indices = @transform_1, window_bounds = array<i64: 8, 32>}, {pipeline_mode = #tpu.pipeline_mode<synchronous>, transform_indices = @transform_2, window_bounds = array<i64: 8, 1>}, {transform_indices = @transform_3, window_bounds = array<i64: 1, 8, 64>}]} {
    %c0 = arith.constant 0 : index
    %c0_0 = arith.constant 0 : index
    %c0_1 = arith.constant 0 : index
    %0 = vector.load %arg2[%c0, %c0_0, %c0_1] : memref<1x64x32xf32, #tpu.memory_space<vmem>>, vector<1x64x32xf32>
    %1 = vector.shape_cast %0 : vector<1x64x32xf32> to vector<64x32xf32>
    %2 = arith.truncf %1 : vector<64x32xf32> to vector<64x32xbf16>
    %c0_2 = arith.constant 0 : index
    %c0_3 = arith.constant 0 : index
    %3 = vector.load %arg3[%c0_2, %c0_3] : memref<8x32xbf16, #tpu.memory_space<vmem>>, vector<8x32xbf16>
    %cst = arith.constant dense<0.000000e+00> : vector<8x64xf32>
    %4 = tpu.matmul %3, %2, %cst {dimension_numbers = #tpu.dot_dimension_numbers<[1], [1], [0], [0], [0, 0, 1, 0], [], []>} : vector<8x32xbf16>, vector<64x32xbf16>, vector<8x64xf32> -> vector<8x64xf32>
    %c0_4 = arith.constant 0 : index
    %c0_5 = arith.constant 0 : index
    %5 = vector.load %arg4[%c0_4, %c0_5] : memref<8x1xf32, #tpu.memory_space<vmem>>, vector<8x1xf32>
    %6 = vector.broadcast %5 : vector<8x1xf32> to vector<8x64xf32>
    %7 = arith.addf %4, %6 : vector<8x64xf32>
    %c0_6 = arith.constant 0 : index
    %c0_7 = arith.constant 0 : index
    %c0_8 = arith.constant 0 : index
    %8 = vector.load %arg5[%c0_6, %c0_7, %c0_8] : memref<1x8x64xf32, #tpu.memory_space<vmem>>, vector<1x8x64xf32>
    %9 = vector.shape_cast %8 : vector<1x8x64xf32> to vector<8x64xf32>
    %10 = vector.shape_cast %7 : vector<8x64xf32> to vector<1x8x64xf32>
    tpu.vector_store %arg5[%c0_6, %c0_7, %c0_8], %10 {strides = array<i32>} : memref<1x8x64xf32, #tpu.memory_space<vmem>>, vector<1x8x64xf32>,
    return
  }
  func.func @transform_0(%arg0: i32, %arg1: i32) -> (i32, i32, i32) {
    %c0_i32 = arith.constant 0 : i32
    %c0_i32_0 = arith.constant 0 : i32
    return %arg0, %arg1, %c0_i32 : i32, i32, i32
  }
  func.func @transform_1(%arg0: i32, %arg1: i32) -> (i32, i32) {
    %c0_i32 = arith.constant 0 : i32
    %c0_i32_0 = arith.constant 0 : i32
    %c0_i32_1 = arith.constant 0 : i32
    return %c0_i32, %c0_i32_0 : i32, i32
  }
  func.func @transform_2(%arg0: i32, %arg1: i32) -> (i32, i32) {
    %c0_i32 = arith.constant 0 : i32
    %c0_i32_0 = arith.constant 0 : i32
    %c0_i32_1 = arith.constant 0 : i32
    return %c0_i32, %c0_i32_0 : i32, i32
  }
  func.func @transform_3(%arg0: i32, %arg1: i32) -> (i32, i32, i32) {
    %c0_i32 = arith.constant 0 : i32
    %c0_i32_0 = arith.constant 0 : i32
    return %arg0, %c0_i32, %arg1 : i32, i32, i32
  }
}

</mosaic_0001>

<bundles_post_ra>
// kernel: decoder_linear_forward.1
= control target key start
LH: loop header
LB: loop body
LE: loop exit
PB: predicated region body
PF: predicated region fallthrough
CT: control target
= control target key end

     0   :  { %s464_s12 = smov 0   ;;  %s466_s13 = smov 0   ;;  %s512_s0 = inlined_call_operand.vmem [shape: f32[2,64,32], index: 0, kind: input, shape index: {}]   ;;  %s513_s1 = inlined_call_operand.vmem [shape: bf16[8,32], index: 1, kind: input, shape index: {}]   ;;  %s514_s2 = inlined_call_operand.vmem [shape: f32[8,1], index: 2, kind: input, shape index: {}]   ;;  %s515_s3 = inlined_call_operand.vmem [shape: f32[2,8,64], index: 3, kind: output, shape index: {}]  }
   0x1   :  { %s468_s14 = smov 0  }
   0x2 LB: > { %s25_s15 = sadd.s32 1, %s435_s13  ;;  %p364_p0 = scmp.ge.s32.totalorder %s439_s14, 1  ;;  %s439_s14 = sphi %s468_s14, %s13_s14   ;;  %s435_s13 = sphi %s466_s13, %s517_s13   ;;  %s431_s12 = sphi %s464_s12, %s516_s12  }
   0x3   : > { %p27_p1 = scmp.ge.s32.totalorder %s25_s15, 2  ;;  %p158_p2 = scmp.lt.s32.totalorder %s439_s14, 3 }
   0x5   : > { %s519_s15 = smov (%p27_p1, %s25_s15), 0  ;;  %p159_p3 = pnand %p364_p0, %p158_p2 }
   0x6   : > { %p189_p4 = scmp.lt.s32.totalorder (!%p159_p3), %s431_s12, 1  ;;  %v441_v0 = vmov (!%p159_p3), 0.0   ;;  %vm442_vm0 = vmmov (!%p159_p3), 0   ;;  %v219_v1 = vld [vmem:[%s514_s2] sm:$0xff] (!%p159_p3)  ;;  %v443_v2 = vmov (!%p159_p3), 0   ;;  %vm225_vm1 = vcmask (!%p159_p3), 261120  }
   0x7   : > { %162 = sbr.rel (%p159_p3) target bundleno = 267 (0x10b), region = 32  ;;  %377 = vmatprep.subr.bf16.mxu0 (!%p159_p3), %v441_v0  ;;  %385 = vmatprep.mubr.msk.bf16.mxu0 (!%p159_p3), %vm442_vm0, %v441_v0  ;;  %v218_v19 = vld [vmem:[%s513_s1] sm:$0xf] (!%p159_p3)  ;;  %vm281_vm2 = vcmask (!%p159_p3), 523264  }
   0x8   : > { %416 = vset.pattern.permute.xlu0 (!%p159_p3), %v443_v2 }
   0x9   : > { %222 = vperm.xlu0 (!%p159_p3), %416, %v219_v1  }
   0xe   : > { %s521_s12 = smov (!%p189_p4, %s431_s12), 1 }
   0xf   : > { %s371_s18 = sshll.u32 %s521_s12, 6  ;;  %s367_s24 = sshll.u32 %s521_s12, 3 }
  0x10   : > { %s196_s21 = scalar_lea.vmem %s512_s0, %s371_s18  ;;  %s204_s27 = scalar_lea.vmem %s515_s3, %s367_s24 }
  0x11   : > { %v206_v3 = vld [vmem:[%s196_s21] sm:$0xff]  ;;  %v207_v4 = vld [vmem:[%s196_s21 + $0x8] sm:$0xff]  ;;  %v208_v6 = vld [vmem:[%s196_s21 + $0x10] sm:$0xff] }
  0x12   : > { %v214_v5 = vpack.c.bf16 %v207_v4, %v206_v3  ;;  %v209_v7 = vld [vmem:[%s196_s21 + $0x18] sm:$0xff]  ;;  %v210_v11 = vld [vmem:[%s196_s21 + $0x20] sm:$0xff]  ;;  %v211_v12 = vld [vmem:[%s196_s21 + $0x28] sm:$0xff] }
  0x13   : > { %v215_v9 = vpack.c.bf16 %v209_v7, %v208_v6  ;;  %v216_v13 = vpack.c.bf16 %v211_v12, %v210_v11  ;;  %v212_v15 = vld [vmem:[%s196_s21 + $0x30] sm:$0xff]  ;;  %v213_v16 = vld [vmem:[%s196_s21 + $0x38] sm:$0xff] }
  0x14   : > { %v230_v8 = vsel %vm225_vm1, %v214_v5, 0  ;;  %v217_v17 = vpack.c.bf16 %v213_v16, %v212_v15 }
  0x15   : > { %378 = vmatpush3.bf16.xpose.msra.mxu0 %v230_v8  ;;  %v233_v10 = vsel %vm225_vm1, %v215_v9, 0  ;;  %v236_v14 = vsel %vm225_vm1, %v216_v13, 0 }
  0x16   : > { %379 = vmatprep.subr.bf16.mxu0 %v441_v0  ;;  %v239_v18 = vsel %vm225_vm1, %v217_v17, 0 }
  0x1d   : > { %380 = vmatpush3.bf16.xpose.msra.mxu0 %v233_v10 }
  0x1e   : > { %381 = vmatprep.subr.bf16.mxu0 %v441_v0 }
  0x25   : > { %382 = vmatpush3.bf16.xpose.msra.mxu0 %v236_v14 }
  0x26   : > { %383 = vmatprep.subr.bf16.mxu0 %v441_v0 }
  0x2d   : > { %384 = vmatpush3.bf16.xpose.msra.mxu0 %v239_v18 }
  0x34   : > { %386 = vmatmul.mubr.msk.bf16.vlgmr.msra.gmra.mrb[0].mxu0 %vm225_vm1, %v218_v19 }
  0x88   : > { %v223_v20 = vpop.permute.xlu0 %222 }
 0x107   : > { %v275_v21 = vpop.f32.mrb[0].mxu0 }
 0x108   : > { %v276_v22 = vadd.f32 %v275_v21, %v223_v20  ;;  %v387_v23 = vpop.f32.mrb[1].mxu0 }
 0x109   : > { %v278_v24 = vpop.f32.mrb[2].mxu0 }
 0x10a   : > { %282 = vst.msk [vmem:[%s204_s27] sm:$0xff] %vm281_vm2, %v276_v22  ;;  %v388_v25 = vpop.f32.mrb[3].mxu0 }
 0x10b PF: > { %s13_s14 = sadd.s32 1, %s439_s14   ;;  %s516_s12 = smov %s435_s13 }
 0x10c   : > { %p10_p5 = scmp.ge.s32.totalorder %s13_s14, 4   ;;  %s517_s13 = smov %s519_s15 }
 0x10e   :  { %12 = sbr.rel (!%p10_p5) target bundleno = 2 (0x2), region = 62 }

</bundles_post_ra>
